<compile_context>
chip_gen: v7x
topology: tpu7x:2x2x1
jax: 0.10.0
libtpu: 0.0.40
codegen_flags: <defaults>
</compile_context>

<pallas_src>
import numpy as np
import jax
import jax.numpy as jnp
from jax.experimental import pallas as pl
from jax.experimental.pallas import tpu as pltpu

NGRAM = 3
EPS = 1e-5                       # torch.nn.LayerNorm default
VMEM_TILE_BUDGET = 40 * 1024 * 1024   # conservative: leaves headroom on v7x's 64 MiB/TC


def _round_up(x, m):
    return ((x + m - 1) // m) * m


def _sigmoid_kernel(z):
    # numerically-stable sigmoid; the divide is a single EUP approx reciprocal (free slot)
    ez = jnp.exp(-jnp.abs(z))
    r = pl.reciprocal(1.0 + ez, approx=True)
    return jnp.where(z >= 0, r, ez * r)


# -----------------------------------------------------------------------------------
# Fused kernel. For every (batch, position) output row tile it:
#   1. computes x0 = e_word @ w_lin and z0 = x0 @ w_attn ONCE (MXU, bf16 in / f32 acc),
#   2. forms the three trigram-role contributions (x0 + bq[q]) * sigmoid(z0 + cq[q]) and
#      applies the folded {0,1} merge scale of each role, summing them — this reproduces
#      the gate, merge_ngrams' shift-add and the ragged gather,
#   3. adds aux_embeddings and applies model.norm (single-pass LayerNorm, folded affine).
# NOTE: applying the {0,1} scale after the gate is equivalent to the module's
# "ngram_index before attn" ordering only because the scales are exactly binary.
# -----------------------------------------------------------------------------------
def fused_kernel(e_ref, scl_ref, aux_ref, wl_ref, wa_ref, bq_ref, cq_ref,
                 gamma_ref, beta_ref, o_ref):
    wl = wl_ref[...]             # (HS, H) bf16, resident across grid steps
    wa = wa_ref[...]             # (H, H)  bf16, resident
    bq = bq_ref[...]             # (3, H)  f32 : pos_emb3[q] @ w_lin + b_lin
    cq = cq_ref[...]             # (3, H)  f32 : bq @ w_attn + b_attn
    scl = scl_ref[...]           # (TM, 3) f32 — per-role merge scales (binary)

    # shared matmuls for all three roles (bf16 inputs, f32 accumulation)
    x0 = jnp.dot(e_ref[...], wl, preferred_element_type=jnp.float32)
    z0 = jnp.dot(x0.astype(jnp.bfloat16), wa, preferred_element_type=jnp.float32)

    # role contributions; acc initialized with q=0 (no zero-init + extra add)
    acc = (x0 + bq[0:1, :]) * _sigmoid_kernel(z0 + cq[0:1, :]) * scl[:, 0:1]
    acc = acc + (x0 + bq[1:2, :]) * _sigmoid_kernel(z0 + cq[1:2, :]) * scl[:, 1:2]
    acc = acc + (x0 + bq[2:3, :]) * _sigmoid_kernel(z0 + cq[2:3, :]) * scl[:, 2:3]

    # merge_ngrams: "+ aux_embeddings"   (aux stored bf16, summed in f32)
    m = acc + aux_ref[...].astype(jnp.float32)

    # model.norm: single-pass LayerNorm with folded affine
    inv_h = 1.0 / m.shape[-1]
    s = jnp.sum(m, axis=-1, keepdims=True)
    s2 = jnp.sum(m * m, axis=-1, keepdims=True)
    mu = s * inv_h
    var = s2 * inv_h - mu * mu
    rstd = jax.lax.rsqrt(var + EPS)
    scale = gamma_ref[...] * rstd            # (TM, H)
    shift = beta_ref[...] - mu * scale       # (TM, H)
    o_ref[...] = (m * scale + shift).astype(o_ref.dtype)


def _vmem_need_bytes(tm, hs, h):
    bf16, f32 = 2, 4
    tiles = tm * hs * bf16 + tm * NGRAM * f32 + 2 * tm * h * bf16       # e, scl, aux, out
    consts = (hs * h + h * h) * bf16 + (2 * NGRAM + 2) * h * f32        # wl, wa, bq, cq, gamma, beta
    scratch = 4 * tm * h * f32                                          # x0, z0, acc/m temporaries
    return 2 * (tiles + consts) + scratch                               # x2: default double-buffering


def _choose_row_tile(r, hs, h):
    """Largest bf16-native (multiple-of-16) row tile, capped at 512, fitting the VMEM budget."""
    tm = min(512, _round_up(max(r, 16), 16))
    while tm > 16 and _vmem_need_bytes(tm, hs, h) > VMEM_TILE_BUDGET:
        tm = max(16, _round_up(tm // 2, 16))
    return tm, _vmem_need_bytes(tm, hs, h)


def fused_forward_pallas(e_word, scales, aux, wl_bf16, wa_bf16, bq, cq, gamma, beta,
                         tm, vmem_limit):
    r, hs = e_word.shape
    h = wl_bf16.shape[1]
    row = lambda d: pl.BlockSpec((tm, d), lambda i: (i, 0))
    full = lambda s: pl.BlockSpec(s, lambda i: (0, 0))
    return pl.pallas_call(
        fused_kernel,
        out_shape=jax.ShapeDtypeStruct((r, h), jnp.bfloat16),
        grid_spec=pltpu.PrefetchScalarGridSpec(
            num_scalar_prefetch=0,
            grid=(pl.cdiv(r, tm),),           # edge tile (if any) masked by Pallas — no padding pass
            in_specs=[row(hs),                # word-embedding rows (bf16)
                      row(NGRAM),             # folded merge scales
                      row(h),                 # aux embeddings (bf16)
                      full((hs, h)),          # w_lin  (bf16, resident)
                      full((h, h)),           # w_attn (bf16, resident)
                      full((NGRAM, h)),       # bq
                      full((NGRAM, h)),       # cq
                      full((1, h)), full((1, h))],   # LayerNorm gamma / beta
            out_specs=row(h),
        ),
        compiler_params=pltpu.CompilerParams(
            dimension_semantics=("parallel",),
            vmem_limit_bytes=vmem_limit),
    )(e_word, scales, aux, wl_bf16, wa_bf16, bq, cq, gamma, beta)


# --------------------------- pure-JAX reference (original structure) ---------------------------
def build_tri_grams(input_ids_np):
    # TODO(synk): plot.input_ids_to_tri_grams is an external PLOT component; approximated here
    # as one trigram row per non-pad token plus one zero separator row per sequence.
    rows = []
    for toks in input_ids_np:
        length = int((toks != 0).sum())
        for j in range(length):
            left = int(toks[j - 1]) if j > 0 else 0
            right = int(toks[j + 1]) if j < length - 1 else 0
            rows.append([left, int(toks[j]), right])
        rows.append([0, 0, 0])
    return np.asarray(rows, dtype=np.int32)


def _reference_forward(params, input_ids_np, aux):
    """Faithfully mirrors the module structure: flat trigram rows -> linear + gate ->
    merge_ngrams shift-add -> ragged gather -> + aux -> LayerNorm.  Matmul inputs are
    cast to bf16 (f32 accumulation) to match the kernel's MXU precision choice."""
    bsz, seq = input_ids_np.shape
    hs = params["word_emb"].shape[1]
    lens = (input_ids_np != 0).sum(1).astype(np.int32)
    offsets = np.concatenate([[0], np.cumsum(lens + 1)[:-1]]).astype(np.int32)

    ngram_ids = build_tri_grams(input_ids_np)                 # [N, 3]
    n = ngram_ids.shape[0]
    ngram_mask = (ngram_ids > 0).astype(np.float32)
    ngram_mask[:, NGRAM // 2] = 1.0                           # centre always attended
    ngram_index = (ngram_ids[:, NGRAM // 2] > 0).astype(np.float32)

    # TODO(synk): model.embeddings + shallow BERT encoder layers are external; approximated as
    # word + trigram-position lookup with an identity encoder (same approximation as kernel path).
    emb = params["word_emb"][jnp.asarray(ngram_ids)] + params["pos_emb3"][None, :, :]  # [N,3,HS]
    e = emb.reshape(n * NGRAM, hs).astype(jnp.bfloat16)

    x = jnp.dot(e, params["w_lin"].astype(jnp.bfloat16),
                preferred_element_type=jnp.float32) + params["b_lin"]
    x = x * jnp.repeat(jnp.asarray(ngram_index), NGRAM)[:, None]
    z = jnp.dot(x.astype(jnp.bfloat16), params["w_attn"].astype(jnp.bfloat16),
                preferred_element_type=jnp.float32) + params["b_attn"]
    gated = (x * jax.nn.sigmoid(z)
             * jnp.asarray(ngram_mask).reshape(n * NGRAM, 1)).reshape(n, NGRAM, -1)

    # merge_ngrams shift-add
    flat = gated[:, 1]
    flat = flat.at[:-1].add(gated[1:, 0])
    flat = flat.at[1:].add(gated[:-1, 2])

    # ragged gather: hidden_state[i, :lens[i]] = flat[offsets[i] : offsets[i] + lens[i]]
    pos = np.arange(seq)
    gather_idx = np.clip(offsets[:, None] + pos[None, :], 0, n - 1)
    gathered = jnp.take(flat, jnp.asarray(gather_idx), axis=0)
    valid = jnp.asarray((pos[None, :] < lens[:, None]).astype(np.float32))[:, :, None]

    x2 = gathered * valid + aux
    mu = x2.mean(-1, keepdims=True)
    var = ((x2 - mu) ** 2).mean(-1, keepdims=True)
    return (x2 - mu) * jax.lax.rsqrt(var + EPS) * params["gamma"][0] + params["beta"][0]


# --------------------------------------- forward ---------------------------------------
def shallow_skipping_forward(params, input_ids_np, token_type_ids_np, use_pallas=True):
    input_ids_np = np.asarray(input_ids_np)
    bsz, seq = input_ids_np.shape
    hs = params["word_emb"].shape[1]
    h = params["w_lin"].shape[1]
    lens = (input_ids_np != 0).sum(1).astype(np.int32)

    # aux_embeddings = position_embeddings2[:S][None] + token_type_embeddings2(token_type_ids)
    aux = (params["pos_emb2"][:seq][None, :, :]
           + params["tok_type_emb2"][jnp.asarray(token_type_ids_np)]).astype(jnp.float32)

    if not use_pallas:
        return _reference_forward(params, input_ids_np, aux)

    # ---- numpy glue: per-(batch, position) merge scales for the three trigram roles ----
    # Token p of sequence i contributes to merge_ngrams' output row (i, p) three times:
    #   q=0: as the LEFT slot of trigram p+1   (exists iff p+1 < lens[i])
    #   q=1: as the CENTRE of its own trigram  (exists iff p   < lens[i])
    #   q=2: as the RIGHT slot of trigram p-1  (exists iff 1 <= p < lens[i])
    # The module's ngram_index / ngram_attention_mask factors collapse to exactly these {0,1}
    # scales (separator trigram rows and padding give 0), so the shift-add and the ragged
    # gather of merge_ngrams are absorbed into the row layout of the fused kernel.
    pos = np.arange(seq)[None, :]
    valid = pos < lens[:, None]
    scale_q0 = (pos + 1 < lens[:, None]).astype(np.float32)
    scale_q1 = valid.astype(np.float32)
    scale_q2 = (valid & (pos >= 1)).astype(np.float32)
    scales = np.stack([scale_q0, scale_q1, scale_q2], axis=-1).reshape(bsz * seq, NGRAM)

    r = bsz * seq

    # TODO(synk): model.embeddings + shallow BERT encoder are external; approximated as word +
    # trigram-position lookup with an identity encoder.  Under that approximation the three role
    # streams differ only by pos_emb3[q], so their linear/attn projections fold into per-role
    # bias vectors (bq, cq) and the MXU work / embedding HBM traffic is paid once, not 3x.
    e_word = params["word_emb"][jnp.asarray(input_ids_np)].reshape(r, hs).astype(jnp.bfloat16)
    bq = (params["pos_emb3"] @ params["w_lin"] + params["b_lin"]).astype(jnp.float32)   # (3, H)
    cq = (bq @ params["w_attn"] + params["b_attn"]).astype(jnp.float32)                 # (3, H)

    tm, need = _choose_row_tile(r, hs, h)
    vmem_limit = int(min(max(2 * need, 32 << 20), 48 << 20))

    out = fused_forward_pallas(
        e_word,
        jnp.asarray(scales, dtype=jnp.float32),
        aux.reshape(r, h).astype(jnp.bfloat16),
        params["w_lin"].astype(jnp.bfloat16),
        params["w_attn"].astype(jnp.bfloat16),
        bq, cq, params["gamma"], params["beta"],
        tm, vmem_limit)
    return out.reshape(bsz, seq, h)          # bf16 (downstream LayerNorm output)


def init_params(key, vocab, seq, hs, h):
    ks = jax.random.split(key, 8)
    s = 0.02
    return {
        "word_emb": s * jax.random.normal(ks[0], (vocab, hs), jnp.float32),
        "pos_emb3": s * jax.random.normal(ks[1], (NGRAM, hs), jnp.float32),
        "w_lin": s * jax.random.normal(ks[2], (hs, h), jnp.float32),
        "b_lin": s * jax.random.normal(ks[3], (1, h), jnp.float32),
        "w_attn": s * jax.random.normal(ks[4], (h, h), jnp.float32),
        "b_attn": s * jax.random.normal(ks[5], (1, h), jnp.float32),
        "pos_emb2": s * jax.random.normal(ks[6], (seq, h), jnp.float32),
        "tok_type_emb2": s * jax.random.normal(ks[7], (2, h), jnp.float32),
        "gamma": jnp.ones((1, h), jnp.float32),
        "beta": jnp.zeros((1, h), jnp.float32),
    }


if __name__ == "__main__":
    key = jax.random.PRNGKey(0)
    B, S, HS, H, VOCAB = 2, 8, 32, 128, 50
    k_ids, k_tt, k_par = jax.random.split(key, 3)

    lens = np.array([S, 5], dtype=np.int32)
    ids_raw = np.array(jax.random.randint(k_ids, (B, S), 1, VOCAB), dtype=np.int32)  # writable copy
    pos = np.arange(S)[None, :]
    input_ids = np.where(pos < lens[:, None], ids_raw, 0).astype(np.int32)           # no in-place write
    token_type_ids = np.array(jax.random.randint(k_tt, (B, S), 0, 2), dtype=np.int32)

    params = init_params(k_par, VOCAB, S, HS, H)

    out = shallow_skipping_forward(params, input_ids, token_type_ids, use_pallas=True)
    out = jax.block_until_ready(out)

    ref = shallow_skipping_forward(params, input_ids, token_type_ids, use_pallas=False)
    ref = jax.block_until_ready(ref)
    np.testing.assert_allclose(np.asarray(out.astype(jnp.float32)), np.asarray(ref),
                               rtol=2e-2, atol=2e-2)

    print("KERNEL_OK")
</pallas_src>

<mosaic_0001>
module attributes {stable_mosaic.version = 11 : i64} {
  func.func @fused_kernel(%arg0: i32, %arg1: memref<16x32xbf16, #tpu.memory_space<vmem>>, %arg2: memref<16x3xf32, #tpu.memory_space<vmem>>, %arg3: memref<16x128xbf16, #tpu.memory_space<vmem>>, %arg4: memref<32x128xbf16, #tpu.memory_space<vmem>>, %arg5: memref<128x128xbf16, #tpu.memory_space<vmem>>, %arg6: memref<3x128xf32, #tpu.memory_space<vmem>>, %arg7: memref<3x128xf32, #tpu.memory_space<vmem>>, %arg8: memref<1x128xf32, #tpu.memory_space<vmem>>, %arg9: memref<1x128xf32, #tpu.memory_space<vmem>>, %arg10: memref<16x128xbf16, #tpu.memory_space<vmem>>) attributes {dimension_semantics = [#tpu.dimension_semantics<parallel>], iteration_bounds = array<i64: 1>, scalar_prefetch = 0 : i64, scratch_operands = 0 : i64, tpu.core_type = #tpu.core_type<tc>, window_params = [{transform_indices = @transform_0, window_bounds = array<i64: 16, 32>}, {transform_indices = @transform_1, window_bounds = array<i64: 16, 3>}, {transform_indices = @transform_2, window_bounds = array<i64: 16, 128>}, {pipeline_mode = #tpu.pipeline_mode<synchronous>, transform_indices = @transform_3, window_bounds = array<i64: 32, 128>}, {pipeline_mode = #tpu.pipeline_mode<synchronous>, transform_indices = @transform_4, window_bounds = array<i64: 128, 128>}, {pipeline_mode = #tpu.pipeline_mode<synchronous>, transform_indices = @transform_5, window_bounds = array<i64: 3, 128>}, {pipeline_mode = #tpu.pipeline_mode<synchronous>, transform_indices = @transform_6, window_bounds = array<i64: 3, 128>}, {pipeline_mode = #tpu.pipeline_mode<synchronous>, transform_indices = @transform_7, window_bounds = array<i64: 1, 128>}, {pipeline_mode = #tpu.pipeline_mode<synchronous>, transform_indices = @transform_8, window_bounds = array<i64: 1, 128>}, {transform_indices = @transform_9, window_bounds = array<i64: 16, 128>}]} {
    %c0 = arith.constant 0 : index
    %c0_0 = arith.constant 0 : index
    %0 = vector.load %arg4[%c0, %c0_0] : memref<32x128xbf16, #tpu.memory_space<vmem>>, vector<32x128xbf16>
    %c0_1 = arith.constant 0 : index
    %c0_2 = arith.constant 0 : index
    %1 = vector.load %arg5[%c0_1, %c0_2] : memref<128x128xbf16, #tpu.memory_space<vmem>>, vector<128x128xbf16>
    %c0_3 = arith.constant 0 : index
    %c0_4 = arith.constant 0 : index
    %2 = vector.load %arg6[%c0_3, %c0_4] : memref<3x128xf32, #tpu.memory_space<vmem>>, vector<3x128xf32>
    %c0_5 = arith.constant 0 : index
    %c0_6 = arith.constant 0 : index
    %3 = vector.load %arg7[%c0_5, %c0_6] : memref<3x128xf32, #tpu.memory_space<vmem>>, vector<3x128xf32>
    %c0_7 = arith.constant 0 : index
    %c0_8 = arith.constant 0 : index
    %4 = vector.load %arg2[%c0_7, %c0_8] : memref<16x3xf32, #tpu.memory_space<vmem>>, vector<16x3xf32>
    %c0_9 = arith.constant 0 : index
    %c0_10 = arith.constant 0 : index
    %5 = vector.load %arg1[%c0_9, %c0_10] : memref<16x32xbf16, #tpu.memory_space<vmem>>, vector<16x32xbf16>
    %cst = arith.constant dense<0.000000e+00> : vector<16x128xf32>
    %6 = tpu.matmul %5, %0, %cst {dimension_numbers = #tpu.dot_dimension_numbers<[1], [0], [0], [1], [0, 0, 1, 1], [], []>} : vector<16x32xbf16>, vector<32x128xbf16>, vector<16x128xf32> -> vector<16x128xf32>
    %7 = arith.truncf %6 : vector<16x128xf32> to vector<16x128xbf16>
    %cst_11 = arith.constant dense<0.000000e+00> : vector<16x128xf32>
    %8 = tpu.matmul %7, %1, %cst_11 {dimension_numbers = #tpu.dot_dimension_numbers<[1], [0], [0], [1], [0, 0, 1, 1], [], []>} : vector<16x128xbf16>, vector<128x128xbf16>, vector<16x128xf32> -> vector<16x128xf32>
    %9 = vector.extract_strided_slice %2 {offsets = [0, 0], sizes = [1, 128], strides = [1, 1]} : vector<3x128xf32> to vector<1x128xf32>
    %10 = vector.broadcast %9 : vector<1x128xf32> to vector<16x128xf32>
    %11 = arith.addf %6, %10 : vector<16x128xf32>
    %12 = vector.extract_strided_slice %3 {offsets = [0, 0], sizes = [1, 128], strides = [1, 1]} : vector<3x128xf32> to vector<1x128xf32>
    %13 = vector.broadcast %12 : vector<1x128xf32> to vector<16x128xf32>
    %14 = arith.addf %8, %13 : vector<16x128xf32>
    %15 = math.absf %14 : vector<16x128xf32>
    %cst_12 = arith.constant 0.000000e+00 : f32
    %16 = vector.broadcast %cst_12 : f32 to vector<16x128xf32>
    %17 = arith.subf %16, %15 : vector<16x128xf32>
    %18 = math.exp %17 : vector<16x128xf32>
    %cst_13 = arith.constant 1.000000e+00 : f32
    %19 = vector.broadcast %cst_13 : f32 to vector<16x128xf32>
    %20 = arith.addf %19, %18 : vector<16x128xf32>
    %21 = tpu.reciprocal %20 {approx = true} : vector<16x128xf32> -> vector<16x128xf32>
    %cst_14 = arith.constant 0.000000e+00 : f32
    %22 = vector.broadcast %cst_14 : f32 to vector<16x128xf32>
    %23 = arith.cmpf oge, %14, %22 : vector<16x128xf32>
    %24 = arith.mulf %18, %21 : vector<16x128xf32>
    %25 = arith.select %23, %21, %24 : vector<16x128xi1>, vector<16x128xf32>
    %26 = arith.mulf %11, %25 : vector<16x128xf32>
    %27 = vector.extract_strided_slice %4 {offsets = [0, 0], sizes = [16, 1], strides = [1, 1]} : vector<16x3xf32> to vector<16x1xf32>
    %28 = vector.broadcast %27 : vector<16x1xf32> to vector<16x128xf32>
    %29 = arith.mulf %26, %28 : vector<16x128xf32>
    %30 = vector.extract_strided_slice %2 {offsets = [1, 0], sizes = [1, 128], strides = [1, 1]} : vector<3x128xf32> to vector<1x128xf32>
    %31 = vector.broadcast %30 : vector<1x128xf32> to vector<16x128xf32>
    %32 = arith.addf %6, %31 : vector<16x128xf32>
    %33 = vector.extract_strided_slice %3 {offsets = [1, 0], sizes = [1, 128], strides = [1, 1]} : vector<3x128xf32> to vector<1x128xf32>
    %34 = vector.broadcast %33 : vector<1x128xf32> to vector<16x128xf32>
    %35 = arith.addf %8, %34 : vector<16x128xf32>
    %36 = math.absf %35 : vector<16x128xf32>
    %cst_15 = arith.constant 0.000000e+00 : f32
    %37 = vector.broadcast %cst_15 : f32 to vector<16x128xf32>
    %38 = arith.subf %37, %36 : vector<16x128xf32>
    %39 = math.exp %38 : vector<16x128xf32>
    %cst_16 = arith.constant 1.000000e+00 : f32
    %40 = vector.broadcast %cst_16 : f32 to vector<16x128xf32>
    %41 = arith.addf %40, %39 : vector<16x128xf32>
    %42 = tpu.reciprocal %41 {approx = true} : vector<16x128xf32> -> vector<16x128xf32>
    %cst_17 = arith.constant 0.000000e+00 : f32
    %43 = vector.broadcast %cst_17 : f32 to vector<16x128xf32>
    %44 = arith.cmpf oge, %35, %43 : vector<16x128xf32>
    %45 = arith.mulf %39, %42 : vector<16x128xf32>
    %46 = arith.select %44, %42, %45 : vector<16x128xi1>, vector<16x128xf32>
    %47 = arith.mulf %32, %46 : vector<16x128xf32>
    %48 = vector.extract_strided_slice %4 {offsets = [0, 1], sizes = [16, 1], strides = [1, 1]} : vector<16x3xf32> to vector<16x1xf32>
    %49 = vector.broadcast %48 : vector<16x1xf32> to vector<16x128xf32>
    %50 = arith.mulf %47, %49 : vector<16x128xf32>
    %51 = arith.addf %29, %50 : vector<16x128xf32>
    %52 = vector.extract_strided_slice %2 {offsets = [2, 0], sizes = [1, 128], strides = [1, 1]} : vector<3x128xf32> to vector<1x128xf32>
    %53 = vector.broadcast %52 : vector<1x128xf32> to vector<16x128xf32>
    %54 = arith.addf %6, %53 : vector<16x128xf32>
    %55 = vector.extract_strided_slice %3 {offsets = [2, 0], sizes = [1, 128], strides = [1, 1]} : vector<3x128xf32> to vector<1x128xf32>
    %56 = vector.broadcast %55 : vector<1x128xf32> to vector<16x128xf32>
    %57 = arith.addf %8, %56 : vector<16x128xf32>
    %58 = math.absf %57 : vector<16x128xf32>
    %cst_18 = arith.constant 0.000000e+00 : f32
    %59 = vector.broadcast %cst_18 : f32 to vector<16x128xf32>
    %60 = arith.subf %59, %58 : vector<16x128xf32>
    %61 = math.exp %60 : vector<16x128xf32>
    %cst_19 = arith.constant 1.000000e+00 : f32
    %62 = vector.broadcast %cst_19 : f32 to vector<16x128xf32>
    %63 = arith.addf %62, %61 : vector<16x128xf32>
    %64 = tpu.reciprocal %63 {approx = true} : vector<16x128xf32> -> vector<16x128xf32>
    %cst_20 = arith.constant 0.000000e+00 : f32
    %65 = vector.broadcast %cst_20 : f32 to vector<16x128xf32>
    %66 = arith.cmpf oge, %57, %65 : vector<16x128xf32>
    %67 = arith.mulf %61, %64 : vector<16x128xf32>
    %68 = arith.select %66, %64, %67 : vector<16x128xi1>, vector<16x128xf32>
    %69 = arith.mulf %54, %68 : vector<16x128xf32>
    %70 = vector.extract_strided_slice %4 {offsets = [0, 2], sizes = [16, 1], strides = [1, 1]} : vector<16x3xf32> to vector<16x1xf32>
    %71 = vector.broadcast %70 : vector<16x1xf32> to vector<16x128xf32>
    %72 = arith.mulf %69, %71 : vector<16x128xf32>
    %73 = arith.addf %51, %72 : vector<16x128xf32>
    %c0_21 = arith.constant 0 : index
    %c0_22 = arith.constant 0 : index
    %74 = vector.load %arg3[%c0_21, %c0_22] : memref<16x128xbf16, #tpu.memory_space<vmem>>, vector<16x128xbf16>
    %75 = arith.extf %74 : vector<16x128xbf16> to vector<16x128xf32>
    %76 = arith.addf %73, %75 : vector<16x128xf32>
    %cst_23 = arith.constant dense<0.000000e+00> : vector<16xf32>
    %77 = vector.multi_reduction <add>, %76, %cst_23 [1] : vector<16x128xf32> to vector<16xf32>
    %78 = vector.shape_cast %77 : vector<16xf32> to vector<16x1xf32>
    %79 = arith.mulf %76, %76 : vector<16x128xf32>
    %cst_24 = arith.constant dense<0.000000e+00> : vector<16xf32>
    %80 = vector.multi_reduction <add>, %79, %cst_24 [1] : vector<16x128xf32> to vector<16xf32>
    %81 = vector.shape_cast %80 : vector<16xf32> to vector<16x1xf32>
    %cst_25 = arith.constant 7.812500e-03 : f32
    %82 = vector.broadcast %cst_25 : f32 to vector<16x1xf32>
    %83 = arith.mulf %78, %82 : vector<16x1xf32>
    %cst_26 = arith.constant 7.812500e-03 : f32
    %84 = vector.broadcast %cst_26 : f32 to vector<16x1xf32>
    %85 = arith.mulf %81, %84 : vector<16x1xf32>
    %86 = arith.mulf %83, %83 : vector<16x1xf32>
    %87 = arith.subf %85, %86 : vector<16x1xf32>
    %cst_27 = arith.constant 9.99999974E-6 : f32
    %88 = vector.broadcast %cst_27 : f32 to vector<16x1xf32>
    %89 = arith.addf %87, %88 : vector<16x1xf32>
    %90 = math.rsqrt %89 : vector<16x1xf32>
    %c0_28 = arith.constant 0 : index
    %c0_29 = arith.constant 0 : index
    %91 = vector.load %arg8[%c0_28, %c0_29] : memref<1x128xf32, #tpu.memory_space<vmem>>, vector<1x128xf32>
    %92 = vector.broadcast %91 : vector<1x128xf32> to vector<16x128xf32>
    %93 = vector.broadcast %90 : vector<16x1xf32> to vector<16x128xf32>
    %94 = arith.mulf %92, %93 : vector<16x128xf32>
    %c0_30 = arith.constant 0 : index
    %c0_31 = arith.constant 0 : index
    %95 = vector.load %arg9[%c0_30, %c0_31] : memref<1x128xf32, #tpu.memory_space<vmem>>, vector<1x128xf32>
    %96 = vector.broadcast %83 : vector<16x1xf32> to vector<16x128xf32>
    %97 = arith.mulf %96, %94 : vector<16x128xf32>
    %98 = vector.broadcast %95 : vector<1x128xf32> to vector<16x128xf32>
    %99 = arith.subf %98, %97 : vector<16x128xf32>
    %100 = arith.mulf %76, %94 : vector<16x128xf32>
    %101 = arith.addf %100, %99 : vector<16x128xf32>
    %102 = arith.truncf %101 : vector<16x128xf32> to vector<16x128xbf16>
    %c0_32 = arith.constant 0 : index
    %c0_33 = arith.constant 0 : index
    %103 = vector.load %arg10[%c0_32, %c0_33] : memref<16x128xbf16, #tpu.memory_space<vmem>>, vector<16x128xbf16>
    tpu.vector_store %arg10[%c0_32, %c0_33], %102 {strides = array<i32>} : memref<16x128xbf16, #tpu.memory_space<vmem>>, vector<16x128xbf16>,
    return
  }
  func.func @transform_0(%arg0: i32) -> (i32, i32) {
    %c0_i32 = arith.constant 0 : i32
    %c0_i32_0 = arith.constant 0 : i32
    return %arg0, %c0_i32 : i32, i32
  }
  func.func @transform_1(%arg0: i32) -> (i32, i32) {
    %c0_i32 = arith.constant 0 : i32
    %c0_i32_0 = arith.constant 0 : i32
    return %arg0, %c0_i32 : i32, i32
  }
  func.func @transform_2(%arg0: i32) -> (i32, i32) {
    %c0_i32 = arith.constant 0 : i32
    %c0_i32_0 = arith.constant 0 : i32
    return %arg0, %c0_i32 : i32, i32
  }
  func.func @transform_3(%arg0: i32) -> (i32, i32) {
    %c0_i32 = arith.constant 0 : i32
    %c0_i32_0 = arith.constant 0 : i32
    %c0_i32_1 = arith.constant 0 : i32
    return %c0_i32, %c0_i32_0 : i32, i32
  }
  func.func @transform_4(%arg0: i32) -> (i32, i32) {
    %c0_i32 = arith.constant 0 : i32
    %c0_i32_0 = arith.constant 0 : i32
    %c0_i32_1 = arith.constant 0 : i32
    return %c0_i32, %c0_i32_0 : i32, i32
  }
  func.func @transform_5(%arg0: i32) -> (i32, i32) {
    %c0_i32 = arith.constant 0 : i32
    %c0_i32_0 = arith.constant 0 : i32
    %c0_i32_1 = arith.constant 0 : i32
    return %c0_i32, %c0_i32_0 : i32, i32
  }
  func.func @transform_6(%arg0: i32) -> (i32, i32) {
    %c0_i32 = arith.constant 0 : i32
    %c0_i32_0 = arith.constant 0 : i32
    %c0_i32_1 = arith.constant 0 : i32
    return %c0_i32, %c0_i32_0 : i32, i32
  }
  func.func @transform_7(%arg0: i32) -> (i32, i32) {
    %c0_i32 = arith.constant 0 : i32
    %c0_i32_0 = arith.constant 0 : i32
    %c0_i32_1 = arith.constant 0 : i32
    return %c0_i32, %c0_i32_0 : i32, i32
  }
  func.func @transform_8(%arg0: i32) -> (i32, i32) {
    %c0_i32 = arith.constant 0 : i32
    %c0_i32_0 = arith.constant 0 : i32
    %c0_i32_1 = arith.constant 0 : i32
    return %c0_i32, %c0_i32_0 : i32, i32
  }
  func.func @transform_9(%arg0: i32) -> (i32, i32) {
    %c0_i32 = arith.constant 0 : i32
    %c0_i32_0 = arith.constant 0 : i32
    return %arg0, %c0_i32 : i32, i32
  }
}

</mosaic_0001>

<bundles_post_ra>
// kernel: tpu_custom_call.1
= control target key start
LH: loop header
LB: loop body
LE: loop exit
PB: predicated region body
PF: predicated region fallthrough
CT: control target
= control target key end

     0   :  { %14 = vsyncpa [#allocation3], 0  ;;  %s817_s0 = inlined_call_operand.vmem [shape: bf16[16,32], index: 0, kind: input, shape index: {}]   ;;  %s818_s1 = inlined_call_operand.vmem [shape: f32[16,3], index: 1, kind: input, shape index: {}]   ;;  %s819_s2 = inlined_call_operand.hbm [shape: bf16[16,128], index: 2, kind: input, shape index: {}]   ;;  %s820_s3 = inlined_call_operand.vmem [shape: bf16[32,128], index: 3, kind: input, shape index: {}]   ;;  %s821_s4 = inlined_call_operand.hbm [shape: bf16[128,128], index: 4, kind: input, shape index: {}]   ;;  %s822_s5 = inlined_call_operand.vmem [shape: f32[3,128], index: 5, kind: input, shape index: {}]   ;;  %s823_s6 = inlined_call_operand.vmem [shape: f32[3,128], index: 6, kind: input, shape index: {}]   ;;  %s824_s7 = inlined_call_operand.vmem [shape: f32[1,128], index: 7, kind: input, shape index: {}]   ;;  %s825_s8 = inlined_call_operand.vmem [shape: f32[1,128], index: 8, kind: input, shape index: {}]   ;;  %s826_s9 = inlined_call_operand.hbm [shape: bf16[16,128], index: 9, kind: output, shape index: {}]  }
   0x1   :  { %15 = vsyncpa [#allocation6], 0 }
   0x2   :  { %16 = vsyncpa [#allocation4], 0  ;;  %s644_s30 = smov [#allocation2]   ;;  %s572_s13 = scalar_lea.hbm %s819_s2, 128 }
   0x3   :  { %s26_s10 = sshll.u32 %s644_s30, 4  ;;  %p573_p0 = scmp.ne.s32.totalorder %s819_s2, %s572_s13  ;;  %s27_s10 = int_to_ptr.vmem [resolvable:$true] %s26_s10 }
   0x4   :  { %p576_p1 = scmp.lt.u32.totalorder %s572_s13, %s819_s2 }
   0x6   :  { %p578_p2 = pnand %p576_p1, %p573_p0 }
   0x8   :  { %581 = shalt.err (!%p578_p2)
}
   0x9   :  { %s582_s18 = scalar_lea.vmem %s27_s10, 128  ;;  %p587_p4 = scmp.lt.s32.totalorder %s27_s10, %s27_s10 }
   0xa   :  { %p583_p3 = scmp.ne.s32.totalorder %s27_s10, %s582_s18  ;;  %p588_p5 = scmp.lt.s32.totalorder %s582_s18, %s582_s18 }
   0xc   :  { %p589_p6 = por %p588_p5, %p587_p4 }
   0xe   :  { %p590_p7 = pnand %p589_p6, %p583_p3 }
  0x10   :  { %593 = shalt.err (!%p590_p7)
}
  0x11   :  { %s645_s19 = smov 64   ;;  %s646_s20 = smov 4  }
  0x12   :  { %32 = dma.hbm_to_vmem [thread:$0]  %s819_s2, 128, %s27_s10, [#allocation3], %s645_s19, %s645_s19, %s646_s20  }
  0x13   :  { %s647_s23 = smov [#allocation5]   ;;  %s594_s27 = scalar_lea.hbm %s821_s4, 1024 }
  0x14   :  { %s40_s24 = sshll.u32 %s647_s23, 4  ;;  %p595_p8 = scmp.ne.s32.totalorder %s821_s4, %s594_s27  ;;  %s41_s24 = int_to_ptr.vmem [resolvable:$true] %s40_s24 }
  0x15   :  { %p598_p9 = scmp.lt.u32.totalorder %s594_s27, %s821_s4 }
  0x17   :  { %p600_p10 = pnand %p598_p9, %p595_p8 }
  0x19   :  { %603 = shalt.err (!%p600_p10)
}
  0x1a   :  { %s604_s12 = scalar_lea.vmem %s41_s24, 1024  ;;  %p609_p12 = scmp.lt.s32.totalorder %s41_s24, %s41_s24 }
  0x1b   :  { %p605_p11 = scmp.ne.s32.totalorder %s41_s24, %s604_s12  ;;  %p610_p13 = scmp.lt.s32.totalorder %s604_s12, %s604_s12 }
  0x1d   :  { %p611_p0 = por %p610_p13, %p609_p12 }
  0x1f   :  { %p612_p1 = pnand %p611_p0, %p605_p11 }
  0x21   :  { %615 = shalt.err (!%p612_p1)
}
  0x22   :  { %46 = dma.hbm_to_vmem [thread:$0]  %s821_s4, 1024, %s41_s24, [#allocation6], %s645_s19, %s645_s19, %s646_s20  }
  0x23   :  { %638 = dma.done.wait [#allocation3], 128  }
  0x24   :  { %639 = vsyncadd [#allocation3], 4294967168 }
  0x25   :  { %640 = dma.done.wait [#allocation6], 1024  }
  0x26   :  { %641 = vsyncadd [#allocation6], 4294966272  ;;  %v648_v0 = vmov 0.0   ;;  %vm649_vm0 = vmmov 0   ;;  %v533_v1 = vld [vmem:[%s820_s3] sm:$0xff]   ;;  %v534_v2 = vld [vmem:[%s820_s3 + $0x8] sm:$0xff]   ;;  %v240_v22 = vlaneseq }
  0x27   :  { %491 = vmatprep.subr.bf16.mxu0 %v648_v0  ;;  %495 = vmatprep.mubr.msk.bf16.mxu0 %vm649_vm0, %v648_v0  ;;  %v536_v3 = vld [vmem:[#allocation5] sm:$0xff]   ;;  %v535_v4 = vld [vmem:[%s817_s0] sm:$0xff]   ;;  %v537_v5 = vld [vmem:[#allocation5 + $0x8] sm:$0xff]   ;;  %vm105_vm1 = vcmask 261120   ;;  %v650_v13 = vmov 1   ;;  %v651_v14 = vmov 0  }
  0x28   :  { %499 = vmatprep.subr.bf16.mxu1 %v648_v0  ;;  %515 = vmatprep.mubr.msk.bf16.mxu1 %vm649_vm0, %v648_v0  ;;  %v538_v6 = vld [vmem:[#allocation5 + $0x10] sm:$0xff]   ;;  %v539_v7 = vld [vmem:[#allocation5 + $0x18] sm:$0xff]   ;;  %v540_v8 = vld [vmem:[#allocation5 + $0x20] sm:$0xff]   ;;  %v652_v16 = vmov 2   ;;  %v755_v23 = vshrl.u32 %v240_v22, 7  ;;  %s653_s27 = smov [#allocation7]  }
  0x29   :  { %492 = vmatpush3.bf16.msra.mxu0 %v533_v1  ;;  %500 = vmatpush3.bf16.msra.mxu1 %v536_v3  ;;  %v541_v9 = vld [vmem:[#allocation5 + $0x28] sm:$0xff]   ;;  %v542_v10 = vld [vmem:[#allocation5 + $0x30] sm:$0xff]   ;;  %v543_v11 = vld [vmem:[#allocation5 + $0x38] sm:$0xff]   ;;  %s439_s28 = sshll.u32 %s653_s27, 4  ;;  %s440_s28 = int_to_ptr.vmem [resolvable:$true] %s439_s28 }
  0x2a   :  { %493 = vmatprep.subr.bf16.mxu0 %v648_v0  ;;  %501 = vmatprep.subr.bf16.mxu1 %v648_v0  ;;  %v84_v12 = vld [vmem:[%s818_s1] sm:$0xff]  ;;  %v85_v15 = vld [vmem:[%s818_s1 + $0x8] sm:$0xff]  ;;  %v242_v25 = vsub.s32 0, %v755_v23  ;;  %v286_v26 = vsub.s32 1, %v755_v23  ;;  %v330_v27 = vsub.s32 2, %v755_v23  ;;  %p621_p3 = scmp.lt.s32.totalorder %s440_s28, %s440_s28 }
  0x2b   :  { %530 = vset.pattern.permute.xlu1 %v650_v13  ;;  %529 = vset.pattern.permute.xlu0 %v651_v14  ;;  %v83_v24 = vld [vmem:[%s823_s6] sm:$0x7] }
  0x2c   :  { %317 = vperm.xlu1 %530, %v84_v12   ;;  %274 = vperm.xlu0 %529, %v84_v12   ;;  %v249_v28 = vrot.slane %v83_v24, %v242_v25  ;;  %v293_v29 = vrot.slane %v83_v24, %v286_v26  ;;  %v337_v30 = vrot.slane %v83_v24, %v330_v27 }
  0x2d   :  { %494 = vmatpush3.bf16.msra.mxu0 %v534_v2  ;;  %502 = vmatpush3.bf16.msra.mxu1 %v537_v5 }
  0x2e   :  { %503 = vmatprep.subr.bf16.mxu1 %v648_v0 }
  0x30   :  { %496 = vmatmul.mubr.msk.bf16.vlgmr.msra.gmra.mrb[0].mxu0 %vm105_vm1, %v535_v4  ;;  %321 = vperm.xlu1 %530, %v85_v15  }
  0x31   :  { %504 = vmatpush3.bf16.msra.mxu1 %v538_v6  ;;  %279 = vperm.xlu0 %529, %v85_v15  }
  0x32   :  { %505 = vmatprep.subr.bf16.mxu1 %v648_v0 }
  0x34   :  { %532 = vset.pattern.permute.xlu1 %v652_v16 }
  0x35   :  { %506 = vmatpush3.bf16.msra.mxu1 %v539_v7  ;;  %531 = vset.pattern.permute.xlu0 %v652_v16  ;;  %v82_v7 = vld [vmem:[%s822_s5] sm:$0x7] }
  0x36   :  { %507 = vmatprep.subr.bf16.mxu1 %v648_v0  ;;  %361 = vperm.xlu0 %531, %v84_v12  }
  0x37   :  { %365 = vperm.xlu1 %532, %v85_v15  }
  0x39   :  { %508 = vmatpush3.bf16.msra.mxu1 %v540_v8 }
  0x3a   :  { %509 = vmatprep.subr.bf16.mxu1 %v648_v0 }
  0x3d   :  { %510 = vmatpush3.bf16.msra.mxu1 %v541_v9  ;;  %v287_v9 = vrot.slane %v82_v7, %v286_v26 }
  0x3e   :  { %511 = vmatprep.subr.bf16.mxu1 %v648_v0 }
  0x41   :  { %512 = vmatpush3.bf16.msra.mxu1 %v542_v10  ;;  %v243_v10 = vrot.slane %v82_v7, %v242_v25 }
  0x42   :  { %513 = vmatprep.subr.bf16.mxu1 %v648_v0 }
  0x45   :  { %514 = vmatpush3.bf16.msra.mxu1 %v543_v11  ;;  %v331_v11 = vrot.slane %v82_v7, %v330_v27 }
  0xab   :  { %v275_v8 = vpop.permute.xlu0 %274  ;;  %v318_v12 = vpop.permute.xlu1 %317 }
  0xb0   :  { %v280_v15 = vpop.permute.xlu0 %279 }
 0x103   :  { %v749_v17 = vpop.f32.mrb[0].mxu0 }
 0x104   :  { %v497_v18 = vpop.f32.mrb[1].mxu0  ;;  %v288_v14 = vadd.f32 %v287_v9, %v749_v17  ;;  %v332_v22 = vadd.f32 %v331_v11, %v749_v17 }
 0x105   :  { %v751_v19 = vpop.f32.mrb[2].mxu0  ;;  %v244_v18 = vadd.f32 %v243_v10, %v749_v17 }
 0x106   :  { %v498_v20 = vpop.f32.mrb[3].mxu0  ;;  %v150_v21 = vpack.c.bf16 %v751_v19, %v749_v17  ;;  %v245_v25 = vadd.f32 %v243_v10, %v751_v19  ;;  %v333_v26 = vadd.f32 %v331_v11, %v751_v19 }
 0x108   :  { %516 = vmatmul.mubr.bf16.vlgmr.msra.gmra.mrb[0].mxu1 %v150_v21  ;;  %v289_v21 = vadd.f32 %v287_v9, %v751_v19 }
 0x1db   :  { %v233_v31 = vpop.f32.mrb[0].mxu1 }
 0x1dc   :  { %v763_v32 = vadd.f32 %v249_v28, %v233_v31  ;;  %v765_v33 = vadd.f32 %v293_v29, %v233_v31  ;;  %v767_v34 = vadd.f32 %v337_v30, %v233_v31  ;;  %v517_v35 = vpop.f32.mrb[1].mxu1 }
 0x1dd   :  { %v236_v36 = vpop.f32.mrb[2].mxu1 }
 0x1de   :  { %v252_v37 = vand.u32 2147483647, %v763_v32  ;;  %v296_v38 = vand.u32 2147483647, %v765_v33  ;;  %v340_v39 = vand.u32 2147483647, %v767_v34  ;;  %v772_v40 = vadd.f32 %v249_v28, %v236_v36 }
 0x1df   :  { %v774_v41 = vadd.f32 %v293_v29, %v236_v36  ;;  %v518_v42 = vpop.f32.mrb[3].mxu1  ;;  %v776_v45 = vadd.f32 %v337_v30, %v236_v36  ;;  %vm264_vm2 = vcmp.ge.f32.partialorder %v763_v32, 0.0  ;;  %vm308_vm3 = vcmp.ge.f32.partialorder %v765_v33, 0.0 }
 0x1e0   :  { %v254_v43 = vsub.f32 0.0, %v252_v37  ;;  %v298_v44 = vsub.f32 0.0, %v296_v38  ;;  %v342_v46 = vsub.f32 0.0, %v340_v39  ;;  %v253_v47 = vand.u32 2147483647, %v772_v40  ;;  %v322_v37 = vpop.permute.xlu1 %321  ;;  %v471_v39 = vld [vmem:[#allocation2] sm:$0xff]  }
 0x1e1   :  { %v297_v48 = vand.u32 2147483647, %v774_v41  ;;  %v341_v54 = vand.u32 2147483647, %v776_v45  ;;  %vm352_vm4 = vcmp.ge.f32.partialorder %v767_v34, 0.0  ;;  %vm265_vm5 = vcmp.ge.f32.partialorder %v772_v40, 0.0 }
 0x1e2   :  { %v256_v49 = vmul.f32 1.442695, %v254_v43  ;;  %v300_v50 = vmul.f32 1.442695, %v298_v44  ;;  %v344_v51 = vmul.f32 1.442695, %v342_v46  ;;  %v362_v43 = vpop.permute.xlu0 %361 }
 0x1e3   :  { %v255_v52 = vsub.f32 0.0, %v253_v47  ;;  %v299_v53 = vsub.f32 0.0, %v297_v48  ;;  %v343_v57 = vsub.f32 0.0, %v341_v54  ;;  %vm309_vm6 = vcmp.ge.f32.partialorder %v774_v41, 0.0 }
 0x1e4   :  { %544 = vpow2.f32 %v256_v49  ;;  %vm353_vm7 = vcmp.ge.f32.partialorder %v776_v45, 0.0 }
 0x1e5   :  { %546 = vpow2.f32 %v300_v50  ;;  %v258_v55 = vmul.f32 1.442695, %v255_v52  ;;  %v302_v56 = vmul.f32 1.442695, %v299_v53  ;;  %v346_v58 = vmul.f32 1.442695, %v343_v57  ;;  %v366_v53 = vpop.permute.xlu1 %365 }
 0x1e6   :  { %548 = vpow2.f32 %v344_v51  ;;  %v472_v50 = vunpack.c.l.bf16 %v471_v39 }
 0x1e7   :  { %550 = vpow2.f32 %v258_v55 }
 0x1e8   :  { %552 = vpow2.f32 %v302_v56 }
 0x1e9   :  { %554 = vpow2.f32 %v346_v58 }
 0x1ee   :  { %v545_v59 = vpop.eup %544 }
 0x1ef   :  { %v547_v60 = vpop.eup %546  ;;  %v260_v61 = vadd.f32 1.0, %v545_v59 }
 0x1f0   :  { %v549_v62 = vpop.eup %548  ;;  %v304_v63 = vadd.f32 1.0, %v547_v60 }
 0x1f1   :  { %v551_v0 = vpop.eup %550  ;;  %556 = vrcp.f32 %v260_v61  ;;  %v348_v1 = vadd.f32 1.0, %v549_v62 }
 0x1f2   :  { %v553_v2 = vpop.eup %552  ;;  %558 = vrcp.f32 %v304_v63  ;;  %v261_v3 = vadd.f32 1.0, %v551_v0 }
 0x1f3   :  { %v555_v4 = vpop.eup %554  ;;  %560 = vrcp.f32 %v348_v1  ;;  %v305_v5 = vadd.f32 1.0, %v553_v2 }
 0x1f4   :  { %562 = vrcp.f32 %v261_v3  ;;  %v349_v6 = vadd.f32 1.0, %v555_v4 }
 0x1f5   :  { %564 = vrcp.f32 %v305_v5 }
 0x1f6   :  { %566 = vrcp.f32 %v349_v6 }
 0x1fb   :  { %v557_v13 = vpop.eup %556 }
 0x1fc   :  { %v559_v16 = vpop.eup %558  ;;  %v266_v20 = vmul.f32 %v557_v13, %v545_v59  ;;  %v473_v59 = vunpack.c.h.bf16 %v471_v39 }
 0x1fd   :  { %v561_v23 = vpop.eup %560  ;;  %v310_v24 = vmul.f32 %v559_v16, %v547_v60 }
 0x1fe   :  { %v563_v27 = vpop.eup %562  ;;  %v268_v28 = vsel %vm264_vm2, %v557_v13, %v266_v20  ;;  %v354_v29 = vmul.f32 %v561_v23, %v549_v62  ;;  %v465_v20 = vld [vmem:[%s825_s8] ss:$0 sm:$0xff] }
 0x1ff   :  { %v565_v30 = vpop.eup %564  ;;  %v312_v31 = vsel %vm308_vm3, %v559_v16, %v310_v24  ;;  %v270_v17 = vmul.f32 %v268_v28, %v244_v18  ;;  %v267_v35 = vmul.f32 %v563_v27, %v551_v0 }
 0x200   :  { %v567_v36 = vpop.eup %566  ;;  %v314_v32 = vmul.f32 %v312_v31, %v288_v14  ;;  %v311_v38 = vmul.f32 %v565_v30, %v553_v2  ;;  %v356_v19 = vsel %vm352_vm4, %v561_v23, %v354_v29  ;;  %v464_v14 = vld [vmem:[%s824_s7] ss:$0 sm:$0xff]  ;;  %s616_s7 = scalar_lea.vmem %s440_s28, 128 }
 0x201   :  { %v282_v42 = vmul.f32 %v275_v8, %v270_v17  ;;  %v269_v33 = vsel %vm265_vm5, %v563_v27, %v267_v35  ;;  %v358_v34 = vmul.f32 %v356_v19, %v332_v22  ;;  %v355_v44 = vmul.f32 %v567_v36, %v555_v4  ;;  %p617_p2 = scmp.ne.s32.totalorder %s440_s28, %s616_s7  ;;  %p622_p4 = scmp.lt.s32.totalorder %s616_s7, %s616_s7 }
 0x202   :  { %v324_v46 = vmul.f32 %v318_v12, %v314_v32  ;;  %v313_v40 = vsel %vm309_vm6, %v565_v30, %v311_v38  ;;  %v271_v47 = vmul.f32 %v269_v33, %v245_v25 }
 0x203   :  { %v315_v48 = vmul.f32 %v313_v40, %v289_v21  ;;  %v357_v49 = vsel %vm353_vm7, %v567_v36, %v355_v44  ;;  %v368_v52 = vmul.f32 %v362_v43, %v358_v34  ;;  %p623_p5 = por %p622_p4, %p621_p3 }
 0x204   :  { %v326_v51 = vadd.f32 %v324_v46, %v282_v42  ;;  %v283_v41 = vmul.f32 %v280_v15, %v271_v47  ;;  %v359_v54 = vmul.f32 %v357_v49, %v333_v26 }
 0x205   :  { %v325_v55 = vmul.f32 %v322_v37, %v315_v48  ;;  %p624_p6 = pnand %p623_p5, %p617_p2 }
 0x206   :  { %v370_v56 = vadd.f32 %v368_v52, %v326_v51  ;;  %v369_v58 = vmul.f32 %v366_v53, %v359_v54 }
 0x207   :  { %v327_v57 = vadd.f32 %v325_v55, %v283_v41 }
 0x208   :  { %v376_v60 = vadd.f32 %v472_v50, %v370_v56 }
 0x209   :  { %v371_v61 = vadd.f32 %v369_v58, %v327_v57 }
 0x20a   :  { %378 = vadd.xlane.f32.xlu1 %v376_v60  ;;  %v382_v63 = vmul.f32 %v376_v60, %v376_v60 }
 0x20b   :  { %v377_v45 = vadd.f32 %v473_v59, %v371_v61 }
 0x20d   :  { %380 = vadd.xlane.f32.xlu0 %v377_v45  ;;  %v383_v62 = vmul.f32 %v377_v45, %v377_v45 }
 0x20f   :  { %386 = vadd.xlane.f32.xlu1 %v383_v62 }
 0x211   :  { %384 = vadd.xlane.f32.xlu0 %v382_v63 }
 0x297   :  { %v379_v0 = vpop.xlane.xlu1 %378 }
 0x298   :  { %v388_v2 = vmul.f32 0.0078125, %v379_v0 }
 0x29a   :  { %v381_v1 = vpop.xlane.xlu0 %380  ;;  %v392_v8 = vmul.f32 %v388_v2, %v388_v2 }
 0x29b   :  { %v389_v3 = vmul.f32 0.0078125, %v381_v1 }
 0x29c   :  { %v387_v4 = vpop.xlane.xlu1 %386 }
 0x29d   :  { %v393_v5 = vmul.f32 %v389_v3, %v389_v3  ;;  %v391_v6 = vmul.f32 0.0078125, %v387_v4 }
 0x29e   :  { %v385_v7 = vpop.xlane.xlu0 %384 }
 0x29f   :  { %v395_v9 = vsub.f32 %v391_v6, %v393_v5  ;;  %v390_v10 = vmul.f32 0.0078125, %v385_v7 }
 0x2a1   :  { %v397_v11 = vadd.f32 1e-05, %v395_v9  ;;  %v394_v12 = vsub.f32 %v390_v10, %v392_v8 }
 0x2a3   :  { %568 = vrsqrt.f32 %v397_v11  ;;  %v396_v13 = vadd.f32 1e-05, %v394_v12 }
 0x2a5   :  { %570 = vrsqrt.f32 %v396_v13 }
 0x2ad   :  { %v569_v15 = vpop.eup %568 }
 0x2ae   :  { %v408_v16 = vmul.f32 %v569_v15, %v464_v14 }
 0x2af   :  { %v571_v18 = vpop.eup %570 }
 0x2b0   :  { %v407_v21 = vmul.f32 %v571_v18, %v464_v14  ;;  %v411_v22 = vmul.f32 %v408_v16, %v389_v3  ;;  %v421_v27 = vmul.f32 %v408_v16, %v377_v45 }
 0x2b2   :  { %v410_v23 = vmul.f32 %v407_v21, %v388_v2  ;;  %v419_v24 = vsub.f32 %v465_v20, %v411_v22  ;;  %v420_v26 = vmul.f32 %v407_v21, %v376_v60 }
 0x2b4   :  { %v418_v25 = vsub.f32 %v465_v20, %v410_v23  ;;  %v423_v29 = vadd.f32 %v421_v27, %v419_v24 }
 0x2b6   :  { %v422_v28 = vadd.f32 %v420_v26, %v418_v25 }
 0x2b8   :  { %v477_v30 = vpack.c.bf16 %v423_v29, %v422_v28 }
 0x2ba   :  { %478 = vst [vmem:[#allocation7] sm:$0xff] %v477_v30  }
 0x2bb   :  { %627 = shalt.err (!%p624_p6)
}
 0x2bc   :  { %s628_s30 = scalar_lea.hbm %s826_s9, 128 }
 0x2bd   :  { %p629_p7 = scmp.ne.s32.totalorder %s826_s9, %s628_s30  ;;  %p632_p8 = scmp.lt.u32.totalorder %s628_s30, %s826_s9 }
 0x2bf   :  { %p634_p9 = pnand %p632_p8, %p629_p7 }
 0x2c1   :  { %637 = shalt.err (!%p634_p9)
}
 0x2c2   :  { %445 = dma.vmem_to_hbm [thread:$0]  %s440_s28, 128, %s826_s9, [#allocation4], %s645_s19, %s645_s19, %s646_s20  }
 0x2c3   :  { %642 = dma.done.wait [#allocation4], 128  }
 0x2c4   :  { %643 = vsyncadd [#allocation4], 4294967168 }
 0x2c5   :  { %449 = vsyncpa [#allocation3], 1 }
 0x2c6   :  { %450 = vsyncpa [#allocation6], 1 }
 0x2c7   :  { %451 = vsyncpa [#allocation4], 1 }

</bundles_post_ra>
